<compile_context>
chip_gen: v5e
topology: v5e:2x2
jax: 0.10.0
libtpu: 0.0.40
codegen_flags: <defaults>
</compile_context>

<pallas_src>
import functools

import jax
import jax.numpy as jnp
from jax.experimental import pallas as pl
from jax.experimental.pallas import tpu as pltpu


def shift_aug_kernel(shift_ref, x_ref, o_ref, *, pad, compute_dtype):
    # shift_ref : (2*N,) int32 in SMEM; [2b] = x (width) shift, [2b+1] = y (height)
    # x_ref     : (nb, C, H, W) input block (native dtype)
    # o_ref     : (nb, C, H, W) float32 output block
    nb, C, H, W = x_ref.shape
    base = pl.program_id(0) * nb

    # Shift-independent iota grids, hoisted out of the per-image loop.
    r_idx = jax.lax.broadcasted_iota(jnp.int32, (H, H), 0)   # output row
    h_idx = jax.lax.broadcasted_iota(jnp.int32, (H, H), 1)   # source row
    w_idx = jax.lax.broadcasted_iota(jnp.int32, (W, W), 0)   # source col
    v_idx = jax.lax.broadcasted_iota(jnp.int32, (W, W), 1)   # output col

    def body(i, carry):
        b = base + i
        dx = shift_ref[2 * b] - pad          # width shift  in [-pad, pad]
        dy = shift_ref[2 * b + 1] - pad      # height shift in [-pad, pad]

        # Exact integer one-hot selection with replicate-pad clamping:
        #   Sy[r, h]  = 1  iff  h == clamp(r + dy, 0, H-1)
        #   SxT[w, v] = 1  iff  w == clamp(v + dx, 0, W-1)
        Sy = jnp.where(h_idx == jnp.clip(r_idx + dy, 0, H - 1),
                       1.0, 0.0).astype(compute_dtype)                 # (H, H)
        SxT = jnp.where(w_idx == jnp.clip(v_idx + dx, 0, W - 1),
                        1.0, 0.0).astype(compute_dtype)                # (W, W)

        img = x_ref[i]
        if jnp.issubdtype(img.dtype, jnp.integer):
            img = img.astype(jnp.float32)    # safe int -> float path
        img = img.astype(compute_dtype)                                 # (C, H, W)

        # Column gather: one flat matmul (C*H, W) @ (W, W); RHS pushed once.
        cols = jnp.dot(img.reshape(C * H, W), SxT,
                       preferred_element_type=jnp.float32)
        cols = cols.astype(compute_dtype).reshape(C, H, W)

        # Row gather: batched matmul, Sy shared across channels.
        sy_b = jnp.broadcast_to(Sy, (C, H, H))
        out = jnp.einsum('crh,chv->crv', sy_b, cols,
                         preferred_element_type=jnp.float32)            # (C, H, W)
        o_ref[i] = out.astype(o_ref.dtype)
        return carry

    jax.lax.fori_loop(0, nb, body, 0)


def _round_up(a, m):
    return -(-a // m) * m


def _vmem_capacity_bytes():
    try:
        return int(pltpu.get_tpu_info().vmem_capacity_bytes)
    except Exception:
        return 64 * 2**20     # v7x per-TensorCore VMEM; conservative elsewhere


def _pick_block(n, c, h, w, in_itemsize, compute_itemsize):
    """Images per grid step + vmem limit, counting blocks AND in-kernel temps."""
    lane_w = _round_up(w, 128)
    sub_h = _round_up(h, 8)
    img_in = c * _round_up(h, 8 * max(1, 4 // in_itemsize)) * lane_w * in_itemsize
    img_out = c * sub_h * lane_w * 4                      # output is f32
    per_img_io = img_in + img_out

    # One live set of temporaries (fori_loop): img cast + cols + out (~f32-sized
    # each, upper bound), Sy broadcast (C,H,H), Sy, SxT.
    temps = (3 * img_out
             + (c + 1) * sub_h * _round_up(h, 128) * compute_itemsize
             + _round_up(w, 8) * lane_w * compute_itemsize)

    cap = _vmem_capacity_bytes()
    budget = min(cap // 3, 30 * 2**20)                    # for double-buffered blocks
    cap_imgs = max(1, (budget - temps) // (2 * per_img_io))
    # >= ~8 grid steps when the batch allows: both v7x cores get >= 4 pipelined
    # steps; single-TC chips still get enough steps to hide DMA.
    cap_imgs = min(cap_imgs, max(1, n // 8))
    cap_imgs = max(1, min(cap_imgs, n))

    nb = 1
    for d in range(1, cap_imgs + 1):
        if n % d == 0:
            nb = d

    vmem_bytes = 2 * nb * per_img_io + temps + (2 << 20)
    vmem_limit = int(min(cap * 3 // 4, max(2 * vmem_bytes, 32 << 20)))
    return nb, vmem_limit


def shift_aug(x, shift_int, pad=3):
    """x: (N, C, H, W) any real dtype; shift_int: (N, 2) int32 in [0, 2*pad]
    ([:, 0] = x/width shift, [:, 1] = y/height shift). Returns float32."""
    n, c, h, w = x.shape
    assert h == w
    narrow = (x.dtype == jnp.bfloat16
              or (jnp.issubdtype(x.dtype, jnp.integer) and x.dtype.itemsize == 1))
    compute_dtype = jnp.bfloat16 if narrow else jnp.float32

    nb, vmem_limit = _pick_block(n, c, h, w, jnp.dtype(x.dtype).itemsize,
                                 jnp.dtype(compute_dtype).itemsize)
    grid = (n // nb,)

    # Flat (2N,) int32 shifts: avoids the ~512*N-byte SMEM padding of a (N, 2) array.
    shift_flat = shift_int.astype(jnp.int32).reshape(-1)

    return pl.pallas_call(
        functools.partial(shift_aug_kernel, pad=pad, compute_dtype=compute_dtype),
        out_shape=jax.ShapeDtypeStruct((n, c, h, w), jnp.float32),
        grid_spec=pltpu.PrefetchScalarGridSpec(
            num_scalar_prefetch=1,
            grid=grid,
            in_specs=[pl.BlockSpec((nb, c, h, w), lambda b, s: (b, 0, 0, 0))],
            out_specs=pl.BlockSpec((nb, c, h, w), lambda b, s: (b, 0, 0, 0)),
        ),
        compiler_params=pltpu.CompilerParams(
            dimension_semantics=("parallel",),
            vmem_limit_bytes=vmem_limit),
    )(shift_flat, x)


def shift_aug_random(x, key, pad=3):
    # TODO(synk): torch.randint's RNG stream cannot be reproduced; shifts are
    # sampled from the same Uniform{0,...,2*pad} with jax.random instead.
    n = x.shape[0]
    shift_int = jax.random.randint(key, (n, 2), 0, 2 * pad + 1, dtype=jnp.int32)
    return shift_aug(x, shift_int, pad=pad)


def reference_crop(x, shift_int, pad=3):
    # For integer shifts, grid_sample == crop of the replicate-padded image
    # at offset (ky, kx).
    n, c, h, w = x.shape
    xp = jnp.pad(x.astype(jnp.float32),
                 ((0, 0), (0, 0), (pad, pad), (pad, pad)), mode='edge')

    def crop(img, s):
        return jax.lax.dynamic_slice(img, (0, s[1], s[0]), (c, h, w))

    return jax.vmap(crop)(xp, shift_int)


def _check(key, n, c, h, w, pad, dtype=jnp.float32):
    k_x, k_s = jax.random.split(key)
    x = jax.random.normal(k_x, (n, c, h, w), dtype=jnp.float32).astype(dtype)
    shift_int = jax.random.randint(k_s, (n, 2), 0, 2 * pad + 1, dtype=jnp.int32)
    out = jax.block_until_ready(shift_aug(x, shift_int, pad=pad))
    ref = reference_crop(x, shift_int, pad=pad)
    assert out.shape == (n, c, h, w) and out.dtype == jnp.float32
    err = float(jnp.max(jnp.abs(out - ref)))
    assert err < 1e-3, f"max abs err {err}"


if __name__ == "__main__":
    key = jax.random.PRNGKey(0)
    k0, k1, k2, k3 = jax.random.split(key, 4)

    _check(k0, n=2, c=4, h=16, w=16, pad=3)                       # nb=1, grid=(2,)
    _check(k1, n=16, c=3, h=16, w=16, pad=3)                      # nb=2, grid=(8,): fori path
    _check(k2, n=4, c=3, h=16, w=16, pad=3, dtype=jnp.bfloat16)   # bf16 compute path

    x_small = jax.random.normal(k3, (2, 4, 16, 16), dtype=jnp.float32)
    jax.block_until_ready(shift_aug_random(x_small, k3))          # module-like forward

    print("KERNEL_OK")
</pallas_src>

<mosaic_0001>
module attributes {stable_mosaic.version = 11 : i64} {
  func.func @shift_aug_kernel(%arg0: i32, %arg1: memref<4xi32, #tpu.memory_space<smem>>, %arg2: memref<1x4x16x16xf32, #tpu.memory_space<vmem>>, %arg3: memref<1x4x16x16xf32, #tpu.memory_space<vmem>>) attributes {dimension_semantics = [#tpu.dimension_semantics<parallel>], iteration_bounds = array<i64: 2>, scalar_prefetch = 1 : i64, scratch_operands = 0 : i64, tpu.core_type = #tpu.core_type<tc>, window_params = [{transform_indices = @transform_0, window_bounds = array<i64: 1, 4, 16, 16>}, {transform_indices = @transform_1, window_bounds = array<i64: 1, 4, 16, 16>}]} {
    %c1_i32 = arith.constant 1 : i32
    %0 = arith.muli %arg0, %c1_i32 : i32
    %1 = tpu.iota {dimensions = array<i32: 0>} : vector<16x16xi32>
    %2 = tpu.iota {dimensions = array<i32: 1>} : vector<16x16xi32>
    %3 = tpu.iota {dimensions = array<i32: 0>} : vector<16x16xi32>
    %4 = tpu.iota {dimensions = array<i32: 1>} : vector<16x16xi32>
    %c0_i32 = arith.constant 0 : i32
    %5 = arith.addi %0, %c0_i32 : i32
    %c2_i32 = arith.constant 2 : i32
    %6 = arith.muli %c2_i32, %5 : i32
    %7 = arith.index_cast %6 : i32 to index
    %8 = memref.load %arg1[%7] : memref<4xi32, #tpu.memory_space<smem>>
    %c3_i32 = arith.constant 3 : i32
    %9 = arith.subi %8, %c3_i32 : i32
    %c2_i32_0 = arith.constant 2 : i32
    %10 = arith.muli %c2_i32_0, %5 : i32
    %c1_i32_1 = arith.constant 1 : i32
    %11 = arith.addi %10, %c1_i32_1 : i32
    %12 = arith.index_cast %11 : i32 to index
    %13 = memref.load %arg1[%12] : memref<4xi32, #tpu.memory_space<smem>>
    %c3_i32_2 = arith.constant 3 : i32
    %14 = arith.subi %13, %c3_i32_2 : i32
    %15 = vector.broadcast %14 : i32 to vector<16x16xi32>
    %16 = arith.addi %1, %15 : vector<16x16xi32>
    %c0_i32_3 = arith.constant 0 : i32
    %c15_i32 = arith.constant 15 : i32
    %17 = vector.broadcast %c0_i32_3 : i32 to vector<16x16xi32>
    %18 = arith.maxsi %17, %16 : vector<16x16xi32>
    %19 = vector.broadcast %c15_i32 : i32 to vector<16x16xi32>
    %20 = arith.minsi %19, %18 : vector<16x16xi32>
    %21 = arith.cmpi eq, %2, %20 : vector<16x16xi32>
    %cst = arith.constant 1.000000e+00 : f32
    %cst_4 = arith.constant 0.000000e+00 : f32
    %22 = vector.broadcast %cst : f32 to vector<16x16xf32>
    %23 = vector.broadcast %cst_4 : f32 to vector<16x16xf32>
    %24 = arith.select %21, %22, %23 : vector<16x16xi1>, vector<16x16xf32>
    %25 = vector.broadcast %9 : i32 to vector<16x16xi32>
    %26 = arith.addi %4, %25 : vector<16x16xi32>
    %c0_i32_5 = arith.constant 0 : i32
    %c15_i32_6 = arith.constant 15 : i32
    %27 = vector.broadcast %c0_i32_5 : i32 to vector<16x16xi32>
    %28 = arith.maxsi %27, %26 : vector<16x16xi32>
    %29 = vector.broadcast %c15_i32_6 : i32 to vector<16x16xi32>
    %30 = arith.minsi %29, %28 : vector<16x16xi32>
    %31 = arith.cmpi eq, %3, %30 : vector<16x16xi32>
    %cst_7 = arith.constant 1.000000e+00 : f32
    %cst_8 = arith.constant 0.000000e+00 : f32
    %32 = vector.broadcast %cst_7 : f32 to vector<16x16xf32>
    %33 = vector.broadcast %cst_8 : f32 to vector<16x16xf32>
    %34 = arith.select %31, %32, %33 : vector<16x16xi1>, vector<16x16xf32>
    %35 = arith.index_cast %c0_i32 : i32 to index
    %c0 = arith.constant 0 : index
    %c0_9 = arith.constant 0 : index
    %c0_10 = arith.constant 0 : index
    %36 = vector.load %arg2[%35, %c0, %c0_9, %c0_10] : memref<1x4x16x16xf32, #tpu.memory_space<vmem>>, vector<1x4x16x16xf32>
    %37 = vector.shape_cast %36 : vector<1x4x16x16xf32> to vector<4x16x16xf32>
    %38 = vector.shape_cast %37 : vector<4x16x16xf32> to vector<64x16xf32>
    %cst_11 = arith.constant dense<0.000000e+00> : vector<64x16xf32>
    %39 = tpu.matmul %38, %34, %cst_11 {dimension_numbers = #tpu.dot_dimension_numbers<[1], [0], [0], [1], [0, 0, 1, 1], [], []>} : vector<64x16xf32>, vector<16x16xf32>, vector<64x16xf32> -> vector<64x16xf32>
    %40 = vector.shape_cast %39 : vector<64x16xf32> to vector<4x16x16xf32>
    %41 = vector.shape_cast %24 : vector<16x16xf32> to vector<1x16x16xf32>
    %42 = vector.broadcast %41 : vector<1x16x16xf32> to vector<4x16x16xf32>
    "tpu.trace_start"() <{level = 10 : i32, message = "crh,chv->crv"}> : () -> ()
    %cst_12 = arith.constant dense<0.000000e+00> : vector<4x16x16xf32>
    %43 = tpu.matmul %42, %40, %cst_12 {dimension_numbers = #tpu.dot_dimension_numbers<[2], [1], [1], [2], [0, 0, 0, 1, 1, 2], [0], [0]>} : vector<4x16x16xf32>, vector<4x16x16xf32>, vector<4x16x16xf32> -> vector<4x16x16xf32>
    "tpu.trace_stop"() : () -> ()
    %44 = arith.index_cast %c0_i32 : i32 to index
    %c0_13 = arith.constant 0 : index
    %c0_14 = arith.constant 0 : index
    %c0_15 = arith.constant 0 : index
    %45 = vector.load %arg3[%44, %c0_13, %c0_14, %c0_15] : memref<1x4x16x16xf32, #tpu.memory_space<vmem>>, vector<1x4x16x16xf32>
    %46 = vector.shape_cast %45 : vector<1x4x16x16xf32> to vector<4x16x16xf32>
    %47 = vector.shape_cast %43 : vector<4x16x16xf32> to vector<1x4x16x16xf32>
    tpu.vector_store %arg3[%44, %c0_13, %c0_14, %c0_15], %47 {strides = array<i32>} : memref<1x4x16x16xf32, #tpu.memory_space<vmem>>, vector<1x4x16x16xf32>,
    %c1_i32_16 = arith.constant 1 : i32
    return
  }
  func.func @transform_0(%arg0: i32, %arg1: memref<4xi32, #tpu.memory_space<smem>>) -> (i32, i32, i32, i32) {
    %c0_i32 = arith.constant 0 : i32
    %c0_i32_0 = arith.constant 0 : i32
    %c0_i32_1 = arith.constant 0 : i32
    %c0_i32_2 = arith.constant 0 : i32
    return %arg0, %c0_i32, %c0_i32_0, %c0_i32_1 : i32, i32, i32, i32
  }
  func.func @transform_1(%arg0: i32, %arg1: memref<4xi32, #tpu.memory_space<smem>>) -> (i32, i32, i32, i32) {
    %c0_i32 = arith.constant 0 : i32
    %c0_i32_0 = arith.constant 0 : i32
    %c0_i32_1 = arith.constant 0 : i32
    %c0_i32_2 = arith.constant 0 : i32
    return %arg0, %c0_i32, %c0_i32_0, %c0_i32_1 : i32, i32, i32, i32
  }
}

</mosaic_0001>

<bundles_post_ra>
// kernel: tpu_custom_call.1
= control target key start
LH: loop header
LB: loop body
LE: loop exit
PB: predicated region body
PF: predicated region fallthrough
CT: control target
= control target key end

     0   :  { %s657_s12 = smov [#allocation3]   ;;  %s853_s0 = inlined_call_operand.hbm [shape: s32[4], index: 0, kind: input, shape index: {}]   ;;  %s854_s1 = inlined_call_operand.hbm [shape: f32[2,4,16,16], index: 1, kind: input, shape index: {}]   ;;  %s855_s2 = inlined_call_operand.hbm [shape: f32[2,4,16,16], index: 2, kind: output, shape index: {}]  }
   0x1   :  { %s8_s11 = sshll.u32 %s853_s0, 4  ;;  %s9_s11 = int_to_ptr.hbm [resolvable:$true] %s8_s11 }
   0x2   :  { %11 = dma.hbm_to_smem %s9_s11, 16, %s657_s12, [#allocation2] }
   0x3   :  { %631 = dma.done.wait [#allocation2], 16 }
   0x4   :  { %632 = vsyncadd [#allocation2], 4294967280 }
   0x5   :  { %14 = sfence }
   0x6   :  { %15 = vsyncpa [#allocation5], 0 }
   0x7   :  { %17 = vsyncpa [#allocation5 + $0x1], 0 }
   0x8   :  { %18 = vsyncpa [#allocation6], 0 }
   0x9   :  { %20 = vsyncpa [#allocation6 + $0x1], 0  ;;  %s682_s13 = smov 0   ;;  %s684_s14 = smov 0  }
   0xa   :  { %s686_s15 = smov 0   ;;  %s688_s16 = smov 0  }
   0xb LB: > { %s703_s0 = sadd.s32 4294967295, %s655_s16   ;;  %s451_s17 = sadd.s32 4294967294, %s655_s16   ;;  %s655_s16 = sphi %s688_s16, %s865_s16   ;;  %s651_s15 = sphi %s686_s15, %s864_s15   ;;  %s647_s14 = sphi %s684_s14, %s863_s14   ;;  %s643_s13 = sphi %s682_s13, %s862_s13  }
   0xc   : > { %s707_s18 = sadd.s32 1, %s655_s16   ;;  %s33_s19 = sadd.s32 1, %s651_s15 }
   0xd   : > { %s30_s20 = ssub.s32 %s655_s16, %s707_s18  ;;  %p40_p0 = scmp.ne.s32.totalorder %s651_s15, %s647_s14 }
   0xe   : > { %p31_p1 = scmp.eq.s32.totalorder %s30_s20, 0  ;;  %p41_p2 = scmp.eq.s32.totalorder %s655_s16, 0 }
   0xf   : > { %p46_p3 = scmp.ne.s32.totalorder %s647_s14, %s643_s13  ;;  %p47_p4 = scmp.eq.s32.totalorder %s703_s0, 0 }
  0x10   : > { %s719_s21 = scalar_select %p31_p1, %s651_s15, %s33_s19  }
  0x11   : > { %p721_p5 = por %p41_p2, %p40_p0  ;;  %p725_p6 = por %p47_p4, %p46_p3 }
  0x12   : > { %p70_p7 = scmp.eq.s32.totalorder %s703_s0, 1  ;;  %p76_p8 = scmp.eq.s32.totalorder %s451_s17, 1 }
  0x13   : > { %p504_p10 = scmp.lt.s32.totalorder %s655_s16, 2  ;;  %s96_s26 = sand.u32 1, %s651_s15  }
  0x14   : > { %p732_p11 = por %p70_p7, %p40_p0  ;;  %p736_p12 = por %p76_p8, %p46_p3 }
  0x15   : > { %s486_s27 = sshll.u32 %s655_s16, 6  ;;  %s454_s28 = sshll.u32 %s96_s26, 6 }
  0x16   : > { %s105_s3 = scalar_lea.hbm %s854_s1, %s486_s27  ;;  %s100_s5 = scalar_lea.vmem [#allocation4], %s454_s28 }
  0x17   : > { %s106_s4 = sshll.u32 %s105_s3, 4  ;;  %s108_s6 = sshll.u32 %s100_s5, 4  ;;  %s107_s4 = int_to_ptr.hbm [resolvable:$true] %s106_s4  ;;  %s109_s6 = int_to_ptr.vmem [resolvable:$true] %s108_s6 }
  0x18   : > { %p747_p13 = pnand %p504_p10, %p721_p5  ;;  %p457_p0 = scmp.ge.s32.totalorder %s655_s16, 1 }
  0x19   : > { %p116_p1 = scmp.lt.s32.totalorder %s655_s16, 3  ;;  %s97_s8 = scalar_lea.sflag [#allocation5], %s96_s26 }
  0x1a   : > { %s557_s9 = sshra.s32 %s107_s4, 4  ;;  %p561_p3 = pneg %p747_p13  ;;  %s558_s9 = int_to_ptr.hbm [resolvable:$true] %s557_s9 }
  0x1b   : > { %s559_s10 = scalar_lea.hbm %s558_s9, 64  ;;  %s564_s17 = scalar_lea.hbm %s854_s1, 128 }
  0x1c   : > { %p560_p2 = scmp.ne.s32.totalorder %s558_s9, %s559_s10  ;;  %p565_p5 = scmp.lt.s32.totalorder %s558_s9, %s854_s1 }
  0x1d   : > { %p566_p8 = scmp.lt.s32.totalorder %s564_s17, %s559_s10 }
  0x1e   : > { %p562_p4 = pnand %p561_p3, %p560_p2 }
  0x1f   : > { %p567_p10 = por %p566_p8, %p565_p5 }
  0x20   : > { %p563_p7 = pneg %p562_p4 }
  0x22   : > { %p568_p9 = pnand %p567_p10, %p563_p7 }
  0x24   : > { %571 = shalt.err (!%p568_p9)
}
  0x25   : > { %s658_s22 = smov 128   ;;  %s659_s26 = smov 8  }
  0x26   : > { %499 = dma.hbm_to_vmem [thread:$0]  (!%p747_p13), %s107_s4, 1024, %s109_s6, %s97_s8, %s658_s22, %s658_s22, %s659_s26  }
  0x27   : > { %p117_p2 = pnand %p457_p0, %p116_p1 }
  0x28   : > { %s768_s27 = sand.u32 (!%p117_p2), 1, %s647_s14  }
  0x29   : > { %120 = sbr.rel (%p117_p2) target bundleno = 363 (0x16b), region = 24  ;;  %s458_s28 = sshll.u32 (!%p117_p2), %s768_s27, 6 }
  0x2a   : > { %s123_s29 = scalar_lea.sflag (!%p117_p2), [#allocation5], %s768_s27  ;;  %s774_s30 = scalar_lea.vmem (!%p117_p2), [#allocation4], %s458_s28 }
  0x2e   : > { %634 = dma.done.wait (%p725_p6), %s123_s29, 1024  }
  0x2f   : > { %636 = vsyncadd (%p725_p6), %s123_s29, 4294966272  ;;  %s460_s3 = sshll.u32 %s703_s0, 1  ;;  %v146_v0 = vlaneseq  ;;  %v660_v11 = vmov 1.0   ;;  %v182_v12 = vld [vmem:[%s774_s30] sm:$0xff]  ;;  %vm190_vm4 = vcmask 130048   ;;  %v188_v14 = vld [vmem:[%s774_s30 + $0x30] sm:$0xff] }
  0x30   : > { %s152_s4 = sld [smem:[#allocation3 + %s460_s3]]  ;;  %s154_s5 = sadd.s32 1, %s460_s3  ;;  %v186_v13 = vld [vmem:[%s774_s30 + $0x20] sm:$0xff]  ;;  %v183_v15 = vld [vmem:[%s774_s30 + $0x8] sm:$0xff]  ;;  %v189_v17 = vld [vmem:[%s774_s30 + $0x38] sm:$0xff]  ;;  %v661_v27 = vmov 0.0  }
  0x31   : > { %s155_s6 = sld [smem:[#allocation3 + %s154_s5]]  ;;  %v147_v1 = vshrl.u32 %v146_v0, 7  ;;  %v781_v2 = vand.u32 127, %v146_v0  ;;  %v187_v16 = vld [vmem:[%s774_s30 + $0x28] sm:$0xff]  ;;  %v184_v18 = vld [vmem:[%s774_s30 + $0x10] sm:$0xff]  ;;  %v185_v19 = vld [vmem:[%s774_s30 + $0x18] sm:$0xff] }
  0x32   : > { %s145_s23 = scalar_lea.vmem [#allocation7], %s458_s28  ;;  %s487_s9 = sshll.u32 %s703_s0, 6 }
  0x33   : > { %v148_v3 = vadd.s32 8, %v147_v1  ;;  %s374_s12 = scalar_lea.hbm %s855_s2, %s487_s9  ;;  %s375_s17 = sshll.u32 %s145_s23, 4  ;;  %s376_s17 = int_to_ptr.vmem [resolvable:$true] %s375_s17 }
  0x34   : > { %s377_s19 = sshll.u32 %s374_s12, 4  ;;  %s363_s0 = scalar_lea.sflag [#allocation6], %s768_s27  ;;  %s378_s19 = int_to_ptr.hbm [resolvable:$true] %s377_s19 }
  0x35   : > { %s601_s20 = sshra.s32 %s378_s19, 4  ;;  %s607_s29 = scalar_lea.hbm %s855_s2, 128  ;;  %s602_s20 = int_to_ptr.hbm [resolvable:$true] %s601_s20 }
  0x36   : > { %s461_s7 = sadd.s32 4294967293, %s152_s4  ;;  %s603_s22 = scalar_lea.hbm %s602_s20, 64 }
  0x37   : > { %s462_s8 = sadd.s32 4294967293, %s155_s6  ;;  %v172_v4 = vstv %s461_s7  ;;  %p604_p6 = scmp.ne.s32.totalorder %s602_s20, %s603_s22 }
  0x38   : > { %v157_v5 = vstv %s462_s8  ;;  %v173_v6 = vadd.s32 %v172_v4, %v781_v2  ;;  %p608_p0 = scmp.lt.s32.totalorder %s602_s20, %s855_s2  ;;  %p609_p1 = scmp.lt.s32.totalorder %s607_s29, %s603_s22 }
  0x39   : > { %v158_v7 = vadd.s32 %v157_v5, %v147_v1  ;;  %v159_v8 = vadd.s32 %v157_v5, %v148_v3  ;;  %p605_p9 = pnand %p604_p6, %p732_p11 }
  0x3a   : > { %vm174_vm0 = vcmp.gt.s32.totalorder %v173_v6, 0  ;;  %p610_p3 = por %p609_p1, %p608_p0 }
  0x3b   : > { %v175_v9 = vsel %vm174_vm0, %v173_v6, 0  ;;  %vm160_vm5 = vcmp.gt.s32.totalorder %v158_v7, 0  ;;  %vm162_vm7 = vcmp.gt.s32.totalorder %v159_v8, 0  ;;  %p606_p13 = pneg %p605_p9 }
  0x3c   : > { %vm176_vm1 = vcmp.lt.s32.totalorder %v175_v9, 15  ;;  %v161_v20 = vsel %vm160_vm5, %v158_v7, 0  ;;  %v163_v23 = vsel %vm162_vm7, %v159_v8, 0 }
  0x3d   : > { %v177_v10 = vsel %vm176_vm1, %v175_v9, 15  ;;  %vm164_vm6 = vcmp.lt.s32.totalorder %v161_v20, 15  ;;  %vm166_vm9 = vcmp.lt.s32.totalorder %v163_v23, 15  ;;  %p611_p4 = pnand %p610_p3, %p606_p13 }
  0x3e   : > { %vm179_vm2 = vcmp.eq.s32.totalorder %v148_v3, %v177_v10  ;;  %vm178_vm3 = vcmp.eq.s32.totalorder %v147_v1, %v177_v10  ;;  %v165_v22 = vsel %vm164_vm6, %v161_v20, 15  ;;  %v167_v29 = vsel %vm166_vm9, %v163_v23, 15 }
  0x3f   : > { %463 = vmatpush.msk.msra.mxu0 %vm179_vm2, %v660_v11  ;;  %488 = vmatpush.msk.msra.mxu2 %vm179_vm2, %v660_v11  ;;  %vm168_vm8 = vcmp.eq.s32.totalorder %v781_v2, %v165_v22  ;;  %vm169_vm10 = vcmp.eq.s32.totalorder %v781_v2, %v167_v29 }
  0x40   : > { %489 = vmatpush.msk.msra.mxu3 %vm179_vm2, %v660_v11  ;;  %v170_v28 = vsel %vm168_vm8, 1.0, %v661_v27  ;;  %v171_v33 = vsel %vm169_vm10, 1.0, %v661_v27 }
  0x41   : > { %464 = vmatpush.msk.msra.mxu0 %vm178_vm3, %v660_v11  ;;  %490 = vmatpush.msk.msra.mxu2 %vm178_vm3, %v660_v11 }
  0x42   : > { %465 = vmatmul.msk.f32.vlgmr.msra.gmra.mxu0 %vm190_vm4, %v182_v12  ;;  %469 = vmatmul.msk.f32.vlgmr.msra.gmra.mxu2 %vm190_vm4, %v186_v13 }
  0x43   : > { %491 = vmatpush.msk.msra.mxu3 %vm178_vm3, %v660_v11 }
  0x44   : > { %471 = vmatmul.msk.f32.vlgmr.msra.gmra.mxu3 %vm190_vm4, %v188_v14 }
  0x4a   : > { %466 = vmatmul.msk.f32.gmra.mxu0 %vm190_vm4, %v183_v15  ;;  %470 = vmatmul.msk.f32.gmra.mxu2 %vm190_vm4, %v187_v16 }
  0x4c   : > { %472 = vmatmul.msk.f32.gmra.mxu3 %vm190_vm4, %v189_v17 }
  0x52   : > { %467 = vmatmul.msk.f32.gmra.mxu0 %vm190_vm4, %v184_v18 }
  0x5a   : > { %468 = vmatmul.msk.f32.gmra.mxu0 %vm190_vm4, %v185_v19 }
  0xbf   : > { %v232_v21 = vpop.f32.mrf.mxu0 }
  0xc5   : > { %v244_v24 = vpop.f32.mrf.mxu2 }
  0xc7   : > { %v235_v25 = vpop.f32.mrf.mxu0  ;;  %v250_v26 = vpop.f32.mrf.mxu3 }
  0xc8   : > { %276 = vmatpush.msra.mxu1 %v235_v25 }
  0xca   : > { %277 = vmatpush.msra.mxu1 %v232_v21 }
  0xcb   : > { %473 = vmatmul.msk.f32.vlgmr.msra.gmra.mxu1 %vm190_vm4, %v170_v28 }
  0xcd   : > { %v247_v30 = vpop.f32.mrf.mxu2 }
  0xce   : > { %322 = vmatpush.msrb.mxu3 %v247_v30 }
  0xcf   : > { %v238_v31 = vpop.f32.mrf.mxu0  ;;  %v253_v32 = vpop.f32.mrf.mxu3 }
  0xd0   : > { %323 = vmatpush.msrb.mxu3 %v244_v24  ;;  %345 = vmatpush.msrb.mxu1 %v253_v32 }
  0xd1   : > { %477 = vmatmul.msk.f32.vlgmr.msrb.gmra.mxu3 %vm190_vm4, %v170_v28 }
  0xd2   : > { %346 = vmatpush.msrb.mxu1 %v250_v26 }
  0xd3   : > { %474 = vmatmul.msk.f32.gmra.mxu1 %vm190_vm4, %v171_v33 }
  0xd7   : > { %v241_v34 = vpop.f32.mrf.mxu0 }
  0xd8   : > { %299 = vmatpush.msrb.mxu2 %v241_v34 }
  0xd9   : > { %478 = vmatmul.msk.f32.gmra.mxu3 %vm190_vm4, %v171_v33 }
  0xda   : > { %300 = vmatpush.msrb.mxu2 %v238_v31 }
  0xdb   : > { %475 = vmatmul.msk.f32.vlgmr.msrb.gmra.mxu2 %vm190_vm4, %v170_v28  ;;  %479 = vmatmul.msk.f32.vlgmr.msrb.gmra.mxu1 %vm190_vm4, %v170_v28 }
  0xe3   : > { %476 = vmatmul.msk.f32.gmra.mxu2 %vm190_vm4, %v171_v33  ;;  %480 = vmatmul.msk.f32.gmra.mxu1 %vm190_vm4, %v171_v33 }
 0x148   : > { %v279_v35 = vpop.f32.mrf.mxu1 }
 0x149   : > { %354 = vst.msk [vmem:[%s145_s23] sm:$0xff] %vm190_vm4, %v279_v35 }
 0x150   : > { %v282_v36 = vpop.f32.mrf.mxu1 }
 0x151   : > { %355 = vst.msk [vmem:[%s145_s23 + $0x8] sm:$0xff] %vm190_vm4, %v282_v36 }
 0x154   : > { %v325_v37 = vpop.f32.mrf.mxu3 }
 0x155   : > { %358 = vst.msk [vmem:[%s145_s23 + $0x20] sm:$0xff] %vm190_vm4, %v325_v37 }
 0x158   : > { %v348_v38 = vpop.f32.mrf.mxu1 }
 0x159   : > { %360 = vst.msk [vmem:[%s145_s23 + $0x30] sm:$0xff] %vm190_vm4, %v348_v38 }
 0x15c   : > { %v328_v39 = vpop.f32.mrf.mxu3 }
 0x15d   : > { %359 = vst.msk [vmem:[%s145_s23 + $0x28] sm:$0xff] %vm190_vm4, %v328_v39 }
 0x15e   : > { %v302_v40 = vpop.f32.mrf.mxu2 }
 0x15f   : > { %356 = vst.msk [vmem:[%s145_s23 + $0x10] sm:$0xff] %vm190_vm4, %v302_v40 }
 0x160   : > { %v351_v41 = vpop.f32.mrf.mxu1 }
 0x161   : > { %361 = vst.msk [vmem:[%s145_s23 + $0x38] sm:$0xff] %vm190_vm4, %v351_v41 }
 0x166   : > { %v305_v42 = vpop.f32.mrf.mxu2 }
 0x167   : > { %357 = vst.msk [vmem:[%s145_s23 + $0x18] sm:$0xff] %vm190_vm4, %v305_v42 }
 0x168   : > { %614 = shalt.err (!%p611_p4)
}
 0x169   : > { %s662_s27 = smov 128   ;;  %s663_s4 = smov 8  }
 0x16a   : > { %494 = dma.vmem_to_hbm [thread:$0]  (%p732_p11), %s376_s17, 1024, %s378_s19, %s363_s0, %s662_s27, %s662_s27, %s663_s4  }
 0x16b PF: > { %s392_s5 = sand.u32 1, %s643_s13   ;;  %p861_p7 = scmp.ge.s32.totalorder %s655_s16, 2 }
 0x16c   : > { %s393_s6 = scalar_lea.sflag [#allocation6], %s392_s5 }
 0x16d   : > { %p501_p5 = pnand %p861_p7, %p736_p12 }
 0x16f   : > { %p502_p8 = pneg %p501_p5 }
 0x171   : > { %638 = dma.done.wait (%p502_p8), %s393_s6, 1024  }
 0x172   : > { %640 = vsyncadd (%p502_p8), %s393_s6, 4294966272  ;;  %p23_p10 = scmp.ge.s32.totalorder %s707_s18, 4   ;;  %s862_s13 = smov %s647_s14 }
 0x173   : > { %s863_s14 = smov %s651_s15  ;;  %s864_s15 = smov %s719_s21 }
 0x174   : > { %s865_s16 = smov %s707_s18  ;;  %25 = sbr.rel (!%p23_p10) target bundleno = 11 (0xb), region = 69 }
 0x179   :  { %399 = vsyncpa [#allocation5], 1 }
 0x17a   :  { %401 = vsyncpa [#allocation5 + $0x1], 1 }
 0x17b   :  { %402 = vsyncpa [#allocation6], 1 }
 0x17c   :  { %404 = vsyncpa [#allocation6 + $0x1], 1 }

</bundles_post_ra>
